<compile_context>
chip_gen: v5e
topology: v5e:2x2
jax: 0.10.0
libtpu: 0.0.40
codegen_flags: <defaults>
</compile_context>

<pallas_src>
import functools

import jax
import jax.numpy as jnp
from jax.experimental import pallas as pl
from jax.experimental.pallas import tpu as pltpu


# -----------------------------------------------------------------------------
# Pallas kernels
# -----------------------------------------------------------------------------
def _conv_mm_kernel(a_ref, b_ref, bias_ref, *rest, activation, has_res):
    """Single-M-tile matmul over a K grid, accumulating directly into o_ref.

    Epilogue (last K step) applies the folded-BN bias, an optional fused
    residual add, and an optional ReLU -- so a BasicBlock's
    `out += identity; relu(out)` costs no extra pallas_call / HBM round-trip.
    """
    if has_res:
        res_ref, o_ref = rest
    else:
        (o_ref,) = rest

    @pl.when(pl.program_id(0) == 0)
    def _():
        o_ref[...] = jnp.zeros_like(o_ref)

    o_ref[...] += jnp.dot(a_ref[...], b_ref[...],
                          preferred_element_type=jnp.float32)

    @pl.when(pl.program_id(0) == pl.num_programs(0) - 1)
    def _():
        out = o_ref[...] + bias_ref[...]
        if has_res:
            out = out + res_ref[...]
        if activation == "relu":
            out = jnp.maximum(out, 0.0)
        o_ref[...] = out


_TK_FULL_MAX = 3456   # use a single full-K step when K <= this
_TK_TILE = 2304       # 18 * 128; divides the remaining K values (6912, 13824)


def conv_matmul(a, w, bias, residual=None, activation="none"):
    """act(a @ w + bias [+ residual]); a:(M,K) bf16, w:(K,N) bf16 -> (M,N) f32."""
    M, K = a.shape
    K2, N = w.shape
    assert K == K2
    if K <= _TK_FULL_MAX:
        tk = K
    else:
        tk = _TK_TILE
        assert K % tk == 0, (K, tk)
    ksteps = K // tk

    in_specs = [
        pl.BlockSpec((M, tk), lambda k: (0, k)),   # im2col rows (bf16)
        pl.BlockSpec((tk, N), lambda k: (k, 0)),   # weights (bf16), streamed over K
        pl.BlockSpec((1, N), lambda k: (0, 0)),    # folded-BN bias (f32)
    ]
    args = [a, w, bias]
    if residual is not None:
        in_specs.append(pl.BlockSpec((M, N), lambda k: (0, 0)))  # fused residual (f32)
        args.append(residual)

    return pl.pallas_call(
        functools.partial(_conv_mm_kernel, activation=activation,
                          has_res=residual is not None),
        out_shape=jax.ShapeDtypeStruct((M, N), jnp.float32),
        grid_spec=pltpu.PrefetchScalarGridSpec(
            num_scalar_prefetch=0,
            grid=(ksteps,),
            in_specs=in_specs,
            out_specs=pl.BlockSpec((M, N), lambda k: (0, 0)),
        ),
        compiler_params=pltpu.CompilerParams(
            dimension_semantics=("arbitrary",)),
    )(*args)


def _head_kernel(f_ref, w1_ref, b1_ref, wb_ref, bb_ref, wa_ref, ba_ref, o_ref):
    # AdaptiveAvgPool3d(1): mean over all spatio-temporal positions (rows).
    pooled = jnp.mean(f_ref[...], axis=0, keepdims=True)               # (1, 512)
    # shared_head: Dropout (identity in eval) -> Linear(512,128) -> ReLU -> Dropout.
    shared = jnp.dot(pooled, w1_ref[...],
                     preferred_element_type=jnp.float32) + b1_ref[...]
    shared = jnp.maximum(shared, 0.0)
    # button_path / analog_path.
    button = jax.nn.sigmoid(jnp.dot(shared, wb_ref[...],
                                    preferred_element_type=jnp.float32) + bb_ref[...])
    analog = jax.nn.sigmoid(jnp.dot(shared, wa_ref[...],
                                    preferred_element_type=jnp.float32) + ba_ref[...])
    # torch.cat((button_out, analog_out), dim=1)
    o_ref[:, 0:6] = button
    o_ref[:, 6:14] = analog


def head_forward(features, hp):
    """features: (1, T', H', W', 512) channels-last -> (1, 14)."""
    c = features.shape[-1]
    f = features.reshape(-1, c)                                        # (T'H'W', 512)
    return pl.pallas_call(
        _head_kernel,
        out_shape=jax.ShapeDtypeStruct((1, 14), jnp.float32),
        in_specs=[pl.BlockSpec(memory_space=pltpu.MemorySpace.VMEM)] * 7,
        out_specs=pl.BlockSpec(memory_space=pltpu.MemorySpace.VMEM),
    )(f, hp["w1"], hp["b1"], hp["wb"], hp["bb"], hp["wa"], hp["ba"])


# -----------------------------------------------------------------------------
# Conv3d = channels-last im2col (glue) + Pallas matmul
# -----------------------------------------------------------------------------
def _im2col_3d(x, ksize, stride, padding):
    """x: (N, T, H, W, C) channels-last -> A: (N*To*Ho*Wo, kt*kh*kw*C)."""
    N, T, H, W, C = x.shape
    kt, kh, kw = ksize
    st, sh, sw = stride
    pt, ph, pw = padding
    xp = jnp.pad(x, ((0, 0), (pt, pt), (ph, ph), (pw, pw), (0, 0)))
    To = (T + 2 * pt - kt) // st + 1
    Ho = (H + 2 * ph - kh) // sh + 1
    Wo = (W + 2 * pw - kw) // sw + 1
    cols = []
    for dt in range(kt):
        for dh in range(kh):
            for dw in range(kw):
                patch = xp[:,
                           dt:dt + (To - 1) * st + 1:st,
                           dh:dh + (Ho - 1) * sh + 1:sh,
                           dw:dw + (Wo - 1) * sw + 1:sw, :]
                cols.append(patch)                                     # (N,To,Ho,Wo,C)
    col = jnp.concatenate(cols, axis=-1)                               # (N,To,Ho,Wo,k3*C)
    A = col.reshape(N * To * Ho * Wo, kt * kh * kw * C)
    return A, (To, Ho, Wo)


def conv3d_bn_act(x, cp, stride, padding, activation, residual=None):
    """Conv3d (no bias) + folded eval-mode BN + optional fused residual/ReLU."""
    A, (To, Ho, Wo) = _im2col_3d(x, cp["ksize"], stride, padding)
    A = A.astype(jnp.bfloat16)
    n = x.shape[0]
    cout = cp["w"].shape[1]
    res_flat = None
    if residual is not None:
        res_flat = residual.reshape(-1, cout)                          # no transpose needed
    out = conv_matmul(A, cp["w"], cp["b"], res_flat, activation)       # (M, Cout) f32
    return out.reshape(n, To, Ho, Wo, cout)                            # channels-last


def basic_block(x, blk, stride):
    s = (stride, stride, stride)
    out1 = conv3d_bn_act(x, blk["conv1"], s, (1, 1, 1), "relu")
    if "ds" in blk:
        identity = conv3d_bn_act(x, blk["ds"], s, (0, 0, 0), "none")
    else:
        identity = x
    # conv2 + BN + residual add + ReLU fused in one pallas_call epilogue.
    return conv3d_bn_act(out1, blk["conv2"], (1, 1, 1), (1, 1, 1), "relu",
                         residual=identity)


def r3d18_features(x, p):
    # stem: Conv3d(3,64,(3,7,7),stride=(1,2,2),pad=(1,3,3)) + BN + ReLU
    out = conv3d_bn_act(x, p["stem"], (1, 2, 2), (1, 3, 3), "relu")
    for lname, stride in (("layer1", 1), ("layer2", 2), ("layer3", 2), ("layer4", 2)):
        blocks = p[lname]
        out = basic_block(out, blocks[0], stride)
        out = basic_block(out, blocks[1], 1)
    return out                                                         # (1,T',H',W',512)


# -----------------------------------------------------------------------------
# Deterministic parameter initialization
# -----------------------------------------------------------------------------
_BN_SCALE = 1.0 / (1.0 + 1e-5) ** 0.5   # folded eval-mode BN: gamma=1,beta=0,mean=0,var=1


def _init_conv(key, cout, cin, ksize):
    kt, kh, kw = ksize
    fan_out = cout * kt * kh * kw
    std = (2.0 / fan_out) ** 0.5
    # Stored channels-last / K-major: (kt*kh*kw*Cin, Cout) in bf16, BN folded in.
    w = jax.random.normal(key, (kt, kh, kw, cin, cout), jnp.float32) * std
    w = (w * _BN_SCALE).reshape(kt * kh * kw * cin, cout).astype(jnp.bfloat16)
    b = jnp.zeros((1, cout), jnp.float32)
    return {"w": w, "b": b, "ksize": ksize}


def _init_linear(key, cin, cout, bias_val):
    std = (2.0 / cout) ** 0.5                                          # kaiming fan_out
    w = jax.random.normal(key, (cout, cin), jnp.float32) * std
    return w.T, jnp.full((1, cout), bias_val, jnp.float32)


def make_params(key, input_channels=3):
    keys = iter(jax.random.split(key, 32))
    p = {"stem": _init_conv(next(keys), 64, input_channels, (3, 7, 7))}
    layer_cfg = [("layer1", 64, 64, 1), ("layer2", 64, 128, 2),
                 ("layer3", 128, 256, 2), ("layer4", 256, 512, 2)]
    for name, cin, cout, stride in layer_cfg:
        blocks = []
        for b in range(2):
            in_ch = cin if b == 0 else cout
            blk = {"conv1": _init_conv(next(keys), cout, in_ch, (3, 3, 3)),
                   "conv2": _init_conv(next(keys), cout, cout, (3, 3, 3))}
            if b == 0 and (stride != 1 or in_ch != cout):
                blk["ds"] = _init_conv(next(keys), cout, in_ch, (1, 1, 1))
            blocks.append(blk)
        p[name] = blocks
    w1, b1 = _init_linear(next(keys), 512, 128, 0.0)
    wb, bb = _init_linear(next(keys), 128, 6, 0.0)
    wa, ba = _init_linear(next(keys), 128, 8, 0.5)                     # analog bias = 0.5
    p["head"] = {"w1": w1, "b1": b1, "wb": wb, "bb": bb, "wa": wa, "ba": ba}
    return p


# -----------------------------------------------------------------------------
# Full forward (eval-mode semantics of GameInputNetwork.forward)
# -----------------------------------------------------------------------------
def game_input_forward(x, params, num_frames=4):
    # x: (B, C, H, W); only x[0] is used to update the (zero-initialized) buffer.
    # TODO(synk): the PyTorch module keeps a stateful rolling frame buffer across
    # calls; here it is re-created each call, matching the module's first call.
    _, C, H, W = x.shape
    frame_buffer = jnp.zeros((num_frames, C, H, W), jnp.float32)
    frame_buffer = jnp.roll(frame_buffer, -1, axis=0).at[-1].set(x[0].astype(jnp.float32))
    v = frame_buffer[None].transpose(0, 1, 3, 4, 2)                    # (1, T, H, W, C)
    v = jnp.where(jnp.max(v) > 1.0, v / 255.0, v)
    feats = r3d18_features(v, params)
    # TODO(synk): training-only dropout noise / analog sign-bias are skipped (eval mode).
    return head_forward(feats, params["head"])                         # (1, 14)


if __name__ == "__main__":
    key = jax.random.PRNGKey(0)
    k_param, k_x = jax.random.split(key)

    # Small shapes consistent with the module: batch=2, channels=3, 16x16, 4 frames.
    x = jax.random.uniform(k_x, (2, 3, 16, 16), jnp.float32) * 255.0
    params = make_params(k_param, input_channels=3)

    out = game_input_forward(x, params, num_frames=4)
    out = jax.block_until_ready(out)

    assert out.shape == (1, 14), out.shape
    assert bool(jnp.all(jnp.isfinite(out)))
    assert bool(jnp.all((out >= 0.0) & (out <= 1.0)))                  # sigmoid outputs
    print("KERNEL_OK")
</pallas_src>

<mosaic_0001>
module attributes {stable_mosaic.version = 11 : i64} {
  func.func @_conv_mm_kernel(%arg0: i32, %arg1: memref<256x441xbf16, #tpu.memory_space<vmem>>, %arg2: memref<441x64xbf16, #tpu.memory_space<vmem>>, %arg3: memref<1x64xf32, #tpu.memory_space<vmem>>, %arg4: memref<256x64xf32, #tpu.memory_space<vmem>>) attributes {dimension_semantics = [#tpu.dimension_semantics<arbitrary>], iteration_bounds = array<i64: 1>, scalar_prefetch = 0 : i64, scratch_operands = 0 : i64, tpu.core_type = #tpu.core_type<tc>, window_params = [{transform_indices = @transform_0, window_bounds = array<i64: 256, 441>}, {transform_indices = @transform_1, window_bounds = array<i64: 441, 64>}, {pipeline_mode = #tpu.pipeline_mode<synchronous>, transform_indices = @transform_2, window_bounds = array<i64: 1, 64>}, {pipeline_mode = #tpu.pipeline_mode<synchronous>, transform_indices = @transform_3, window_bounds = array<i64: 256, 64>}]} {
    %c0_i32 = arith.constant 0 : i32
    %0 = arith.cmpi eq, %arg0, %c0_i32 : i32
    %1 = arith.extui %0 : i1 to i32
    %c0_i32_0 = arith.constant 0 : i32
    %2 = arith.cmpi ne, %1, %c0_i32_0 : i32
    scf.if %2 {
      %cst_10 = arith.constant 0.000000e+00 : f32
      %12 = vector.broadcast %cst_10 : f32 to vector<256x64xf32>
      %c0_11 = arith.constant 0 : index
      %c0_12 = arith.constant 0 : index
      %13 = vector.load %arg4[%c0_11, %c0_12] : memref<256x64xf32, #tpu.memory_space<vmem>>, vector<256x64xf32>
      tpu.vector_store %arg4[%c0_11, %c0_12], %12 {strides = array<i32>} : memref<256x64xf32, #tpu.memory_space<vmem>>, vector<256x64xf32>,
    } else {
    }
    %c0 = arith.constant 0 : index
    %c0_1 = arith.constant 0 : index
    %3 = vector.load %arg4[%c0, %c0_1] : memref<256x64xf32, #tpu.memory_space<vmem>>, vector<256x64xf32>
    %c0_2 = arith.constant 0 : index
    %c0_3 = arith.constant 0 : index
    %4 = vector.load %arg1[%c0_2, %c0_3] : memref<256x441xbf16, #tpu.memory_space<vmem>>, vector<256x441xbf16>
    %c0_4 = arith.constant 0 : index
    %c0_5 = arith.constant 0 : index
    %5 = vector.load %arg2[%c0_4, %c0_5] : memref<441x64xbf16, #tpu.memory_space<vmem>>, vector<441x64xbf16>
    %cst = arith.constant dense<0.000000e+00> : vector<256x64xf32>
    %6 = tpu.matmul %4, %5, %cst {dimension_numbers = #tpu.dot_dimension_numbers<[1], [0], [0], [1], [0, 0, 1, 1], [], []>} : vector<256x441xbf16>, vector<441x64xbf16>, vector<256x64xf32> -> vector<256x64xf32>
    %7 = arith.addf %3, %6 : vector<256x64xf32>
    %c0_6 = arith.constant 0 : index
    %c0_7 = arith.constant 0 : index
    %8 = vector.load %arg4[%c0_6, %c0_7] : memref<256x64xf32, #tpu.memory_space<vmem>>, vector<256x64xf32>
    tpu.vector_store %arg4[%c0_6, %c0_7], %7 {strides = array<i32>} : memref<256x64xf32, #tpu.memory_space<vmem>>, vector<256x64xf32>,
    %c0_i32_8 = arith.constant 0 : i32
    %9 = arith.cmpi eq, %arg0, %c0_i32_8 : i32
    %10 = arith.extui %9 : i1 to i32
    %c0_i32_9 = arith.constant 0 : i32
    %11 = arith.cmpi ne, %10, %c0_i32_9 : i32
    scf.if %11 {
      %c0_10 = arith.constant 0 : index
      %c0_11 = arith.constant 0 : index
      %12 = vector.load %arg4[%c0_10, %c0_11] : memref<256x64xf32, #tpu.memory_space<vmem>>, vector<256x64xf32>
      %c0_12 = arith.constant 0 : index
      %c0_13 = arith.constant 0 : index
      %13 = vector.load %arg3[%c0_12, %c0_13] : memref<1x64xf32, #tpu.memory_space<vmem>>, vector<1x64xf32>
      %14 = vector.broadcast %13 : vector<1x64xf32> to vector<256x64xf32>
      %15 = arith.addf %12, %14 : vector<256x64xf32>
      %cst_14 = arith.constant 0.000000e+00 : f32
      %16 = vector.broadcast %cst_14 : f32 to vector<256x64xf32>
      %17 = arith.maximumf %15, %16 : vector<256x64xf32>
      %c0_15 = arith.constant 0 : index
      %c0_16 = arith.constant 0 : index
      %18 = vector.load %arg4[%c0_15, %c0_16] : memref<256x64xf32, #tpu.memory_space<vmem>>, vector<256x64xf32>
      tpu.vector_store %arg4[%c0_15, %c0_16], %17 {strides = array<i32>} : memref<256x64xf32, #tpu.memory_space<vmem>>, vector<256x64xf32>,
    } else {
    }
    return
  }
  func.func @transform_0(%arg0: i32) -> (i32, i32) {
    %c0_i32 = arith.constant 0 : i32
    %c0_i32_0 = arith.constant 0 : i32
    return %c0_i32, %arg0 : i32, i32
  }
  func.func @transform_1(%arg0: i32) -> (i32, i32) {
    %c0_i32 = arith.constant 0 : i32
    %c0_i32_0 = arith.constant 0 : i32
    return %arg0, %c0_i32 : i32, i32
  }
  func.func @transform_2(%arg0: i32) -> (i32, i32) {
    %c0_i32 = arith.constant 0 : i32
    %c0_i32_0 = arith.constant 0 : i32
    %c0_i32_1 = arith.constant 0 : i32
    return %c0_i32, %c0_i32_0 : i32, i32
  }
  func.func @transform_3(%arg0: i32) -> (i32, i32) {
    %c0_i32 = arith.constant 0 : i32
    %c0_i32_0 = arith.constant 0 : i32
    %c0_i32_1 = arith.constant 0 : i32
    return %c0_i32, %c0_i32_0 : i32, i32
  }
}

</mosaic_0001>

<bundles_post_ra>
// kernel: tpu_custom_call.1
= control target key start
LH: loop header
LB: loop body
LE: loop exit
PB: predicated region body
PF: predicated region fallthrough
CT: control target
= control target key end

     0   :  { %vm724_vm0 = vcmask 1043456   ;;  %vm725_vm1 = vcmask 1044480   ;;  %v1771_v3 = vmov 65535   ;;  %vm675_vm2 = vcmask 465920   ;;  %s2926_s1 = inlined_call_operand.vmem [shape: bf16[441,64], index: 1, kind: input, shape index: {}]   ;;  %s2927_s0 = inlined_call_operand.vmem [shape: bf16[256,441], index: 0, kind: input, shape index: {}]   ;;  %s2928_s2 = inlined_call_operand.vmem [shape: f32[1,64], index: 2, kind: input, shape index: {}]   ;;  %s2929_s3 = inlined_call_operand.vmem [shape: f32[256,64], index: 3, kind: output, shape index: {}]  }
   0x1   :  { %v1746_v0 = vld [vmem:[%s2926_s1 + $0x38] sm:$0xff]  ;;  %v726_v4 = vsel %vm724_vm0, 4294967295, %v1771_v3  ;;  %v1745_v5 = vld [vmem:[%s2926_s1 + $0x30] sm:$0xff]  ;;  %v1744_v12 = vld [vmem:[%s2926_s1 + $0x28] sm:$0xff]  ;;  %vm19_vm3 = vcmask 523264  }
   0x2   :  { %v1754_v1 = vld [vmem:[%s2926_s1 + $0x78] sm:$0xff]  ;;  %731 = vmatpush.bf16.msra.mxu0 %v1746_v0  ;;  %v1753_v6 = vld [vmem:[%s2926_s1 + $0x70] sm:$0xff]  ;;  %v727_v10 = vsel %vm725_vm1, %v726_v4, 0  ;;  %v1752_v13 = vld [vmem:[%s2926_s1 + $0x68] sm:$0xff] }
   0x3   :  { %v1762_v2 = vld [vmem:[%s2926_s1 + $0xb8] sm:$0xff]  ;;  %820 = vmatpush.bf16.msra.mxu1 %v1754_v1  ;;  %v1761_v7 = vld [vmem:[%s2926_s1 + $0xb0] sm:$0xff]  ;;  %v1760_v15 = vld [vmem:[%s2926_s1 + $0xa8] sm:$0xff] }
   0x4   :  { %909 = vmatpush.bf16.msra.mxu2 %v1762_v2  ;;  %v1657_v8 = vld [vmem:[%s2926_s1 + $0xd8] sm:$0xf]  ;;  %v1766_v9 = vld [vmem:[%s2926_s1 + $0xd8] sm:$0x10]  ;;  %v1765_v16 = vld [vmem:[%s2926_s1 + $0xd0] sm:$0xff] }
   0x5   :  { %v1658_v11 = vor.u32 %v1766_v9, %v1657_v8  ;;  %v1743_v17 = vld [vmem:[%s2926_s1 + $0x20] sm:$0xff]  ;;  %v1764_v20 = vld [vmem:[%s2926_s1 + $0xc8] sm:$0xff]  ;;  %v1742_v21 = vld [vmem:[%s2926_s1 + $0x18] sm:$0xff] }
   0x6   :  { %732 = vmatpush.bf16.msra.mxu0 %v1745_v5  ;;  %v1751_v18 = vld [vmem:[%s2926_s1 + $0x60] sm:$0xff]  ;;  %v1750_v22 = vld [vmem:[%s2926_s1 + $0x58] sm:$0xff]  ;;  %v1676_v25 = vld [vmem:[%s2927_s0 + $0xc] sm:$0xf] }
   0x7   :  { %821 = vmatpush.bf16.msra.mxu1 %v1753_v6  ;;  %v729_v14 = vand.u32 %v1658_v11, %v727_v10  ;;  %v1759_v19 = vld [vmem:[%s2926_s1 + $0xa0] sm:$0xff]  ;;  %v1758_v23 = vld [vmem:[%s2926_s1 + $0x98] sm:$0xff]  ;;  %v1741_v27 = vld [vmem:[%s2926_s1 + $0x10] sm:$0xff] }
   0x8   :  { %910 = vmatpush.bf16.msra.mxu2 %v1761_v7  ;;  %v1763_v24 = vld [vmem:[%s2926_s1 + $0xc0] sm:$0xff]  ;;  %v1303_v26 = vld [vmem:[%s2927_s0 + $0x18] sm:$0xf0]  ;;  %v1749_v28 = vld [vmem:[%s2926_s1 + $0x50] sm:$0xff] }
   0x9   :  { %1002 = vmatpush.bf16.msra.mxu3 %v729_v14  ;;  %v1757_v29 = vld [vmem:[%s2926_s1 + $0x90] sm:$0xff]  ;;  %v1306_v30 = vor.u32 %v1676_v25, %v1303_v26  ;;  %v1740_v31 = vld [vmem:[%s2926_s1 + $0x8] sm:$0xff]  ;;  %v1739_v34 = vld [vmem:[%s2926_s1] sm:$0xff] }
   0xa   :  { %733 = vmatpush.bf16.msra.mxu0 %v1744_v12  ;;  %v1748_v32 = vld [vmem:[%s2926_s1 + $0x48] sm:$0xff]  ;;  %v1747_v35 = vld [vmem:[%s2926_s1 + $0x40] sm:$0xff]  ;;  %v1677_v37 = vld [vmem:[%s2927_s0 + $0xc] sm:$0xf0] }
   0xb   :  { %822 = vmatpush.bf16.msra.mxu1 %v1752_v13  ;;  %v1756_v33 = vld [vmem:[%s2926_s1 + $0x88] sm:$0xff]  ;;  %v1293_v36 = vld [vmem:[%s2927_s0] sm:$0xf]  ;;  %v1675_v38 = vld [vmem:[%s2927_s0 + $0x4] sm:$0xf] }
   0xc   :  { %911 = vmatpush.bf16.msra.mxu2 %v1760_v15  ;;  %v1295_v39 = vld [vmem:[%s2927_s0 + $0x10] sm:$0xf0]  ;;  %v1755_v40 = vld [vmem:[%s2926_s1 + $0x80] sm:$0xff]  ;;  %v1301_v41 = vld [vmem:[%s2927_s0 + $0x8] sm:$0xf]  ;;  %v1294_v43 = vor.u32 %v1677_v37, %v1293_v36 }
   0xd   :  { %1003 = vmatpush.bf16.msra.mxu3 %v1765_v16  ;;  %v1678_v42 = vld [vmem:[%s2927_s0 + $0x14] sm:$0xf0]  ;;  %v1298_v44 = vor.u32 %v1675_v38, %v1295_v39  ;;  %v1680_v46 = vld [vmem:[%s2927_s0 + $0x2c] sm:$0xf]  ;;  %v1319_v47 = vld [vmem:[%s2927_s0 + $0x38] sm:$0xf0] }
   0xe   :  { %734 = vmatpush.bf16.msra.mxu0 %v1743_v17  ;;  %v1302_v45 = vor.u32 %v1678_v42, %v1301_v41  ;;  %v1322_v48 = vor.u32 %v1680_v46, %v1319_v47  ;;  %v1309_v49 = vld [vmem:[%s2927_s0 + $0x20] sm:$0xf]  ;;  %v1681_v50 = vld [vmem:[%s2927_s0 + $0x2c] sm:$0xf0]  ;;  %v1679_v51 = vld [vmem:[%s2927_s0 + $0x24] sm:$0xf] }
   0xf   :  { %823 = vmatpush.bf16.msra.mxu1 %v1751_v18  ;;  %v1311_v52 = vld [vmem:[%s2927_s0 + $0x30] sm:$0xf0]  ;;  %v1317_v53 = vld [vmem:[%s2927_s0 + $0x28] sm:$0xf]  ;;  %v1682_v54 = vld [vmem:[%s2927_s0 + $0x34] sm:$0xf0]  ;;  %v1310_v55 = vor.u32 %v1681_v50, %v1309_v49 }
  0x10   :  { %912 = vmatpush.bf16.msra.mxu2 %v1759_v19  ;;  %v1314_v56 = vor.u32 %v1679_v51, %v1311_v52  ;;  %v1318_v57 = vor.u32 %v1682_v54, %v1317_v53  ;;  %v1684_v58 = vld [vmem:[%s2927_s0 + $0x4c] sm:$0xf]  ;;  %v1335_v59 = vld [vmem:[%s2927_s0 + $0x58] sm:$0xf0]  ;;  %v1325_v61 = vld [vmem:[%s2927_s0 + $0x40] sm:$0xf] }
  0x11   :  { %1004 = vmatpush.bf16.msra.mxu3 %v1764_v20  ;;  %v1338_v60 = vor.u32 %v1684_v58, %v1335_v59  ;;  %v1685_v62 = vld [vmem:[%s2927_s0 + $0x4c] sm:$0xf0]  ;;  %v1683_v63 = vld [vmem:[%s2927_s0 + $0x44] sm:$0xf]  ;;  %v1327_v0 = vld [vmem:[%s2927_s0 + $0x50] sm:$0xf0] }
  0x12   :  { %735 = vmatpush.bf16.msra.mxu0 %v1742_v21  ;;  %v1333_v1 = vld [vmem:[%s2927_s0 + $0x48] sm:$0xf]  ;;  %v1686_v2 = vld [vmem:[%s2927_s0 + $0x54] sm:$0xf0]  ;;  %v1326_v3 = vor.u32 %v1685_v62, %v1325_v61  ;;  %v1330_v4 = vor.u32 %v1683_v63, %v1327_v0  ;;  %v1688_v6 = vld [vmem:[%s2927_s0 + $0x6c] sm:$0xf] }
  0x13   :  { %824 = vmatpush.bf16.msra.mxu1 %v1750_v22  ;;  %v1334_v5 = vor.u32 %v1686_v2, %v1333_v1  ;;  %v1351_v7 = vld [vmem:[%s2927_s0 + $0x78] sm:$0xf0]  ;;  %v1341_v9 = vld [vmem:[%s2927_s0 + $0x60] sm:$0xf]  ;;  %v1689_v10 = vld [vmem:[%s2927_s0 + $0x6c] sm:$0xf0] }
  0x14   :  { %913 = vmatpush.bf16.msra.mxu2 %v1758_v23  ;;  %v1354_v8 = vor.u32 %v1688_v6, %v1351_v7  ;;  %v1687_v11 = vld [vmem:[%s2927_s0 + $0x64] sm:$0xf]  ;;  %v1343_v12 = vld [vmem:[%s2927_s0 + $0x70] sm:$0xf0]  ;;  %v1349_v13 = vld [vmem:[%s2927_s0 + $0x68] sm:$0xf]  ;;  %v1342_v15 = vor.u32 %v1689_v10, %v1341_v9 }
  0x15   :  { %1005 = vmatpush.bf16.msra.mxu3 %v1763_v24  ;;  %v1690_v14 = vld [vmem:[%s2927_s0 + $0x74] sm:$0xf0]  ;;  %v1346_v16 = vor.u32 %v1687_v11, %v1343_v12  ;;  %v1692_v18 = vld [vmem:[%s2927_s0 + $0x8c] sm:$0xf]  ;;  %v1367_v19 = vld [vmem:[%s2927_s0 + $0x98] sm:$0xf0] }
  0x16   :  { %736 = vmatpush.bf16.msra.mxu0 %v1741_v27  ;;  %v1350_v17 = vor.u32 %v1690_v14, %v1349_v13  ;;  %v1370_v20 = vor.u32 %v1692_v18, %v1367_v19  ;;  %v1357_v21 = vld [vmem:[%s2927_s0 + $0x80] sm:$0xf]  ;;  %v1693_v22 = vld [vmem:[%s2927_s0 + $0x8c] sm:$0xf0]  ;;  %v1691_v23 = vld [vmem:[%s2927_s0 + $0x84] sm:$0xf] }
  0x17   :  { %825 = vmatpush.bf16.msra.mxu1 %v1749_v28  ;;  %v1359_v24 = vld [vmem:[%s2927_s0 + $0x90] sm:$0xf0]  ;;  %v1365_v25 = vld [vmem:[%s2927_s0 + $0x88] sm:$0xf]  ;;  %v1694_v26 = vld [vmem:[%s2927_s0 + $0x94] sm:$0xf0]  ;;  %v1358_v27 = vor.u32 %v1693_v22, %v1357_v21 }
  0x18   :  { %914 = vmatpush.bf16.msra.mxu2 %v1757_v29  ;;  %1659 = vmatmul.msk.bf16.vlgmr.msra.gmra.mxu3 %vm675_vm2, %v1306_v30  ;;  %v1362_v28 = vor.u32 %v1691_v23, %v1359_v24  ;;  %v1366_v29 = vor.u32 %v1694_v26, %v1365_v25  ;;  %v1696_v30 = vld [vmem:[%s2927_s0 + $0xac] sm:$0xf]  ;;  %v1375_v36 = vld [vmem:[%s2927_s0 + $0xb0] sm:$0xf0]  ;;  %v1381_v37 = vld [vmem:[%s2927_s0 + $0xa8] sm:$0xf] }
  0x19   :  { %v1698_v38 = vld [vmem:[%s2927_s0 + $0xb4] sm:$0xf0]  ;;  %v1700_v42 = vld [vmem:[%s2927_s0 + $0xcc] sm:$0xf]  ;;  %v1701_v46 = vld [vmem:[%s2927_s0 + $0xcc] sm:$0xf0] }
  0x1a   :  { %737 = vmatpush.bf16.msra.mxu0 %v1740_v31  ;;  %v1383_v31 = vld [vmem:[%s2927_s0 + $0xb8] sm:$0xf0]  ;;  %v1382_v41 = vor.u32 %v1698_v38, %v1381_v37  ;;  %v1699_v47 = vld [vmem:[%s2927_s0 + $0xc4] sm:$0xf]  ;;  %v1397_v49 = vld [vmem:[%s2927_s0 + $0xc8] sm:$0xf] }
  0x1b   :  { %826 = vmatpush.bf16.msra.mxu1 %v1748_v32  ;;  %v1386_v32 = vor.u32 %v1696_v30, %v1383_v31  ;;  %v1702_v50 = vld [vmem:[%s2927_s0 + $0xd4] sm:$0xf0]  ;;  %v1704_v54 = vld [vmem:[%s2927_s0 + $0xec] sm:$0xf]  ;;  %v1405_v58 = vld [vmem:[%s2927_s0 + $0xe0] sm:$0xf] }
  0x1c   :  { %915 = vmatpush.bf16.msra.mxu2 %v1756_v33  ;;  %v1373_v33 = vld [vmem:[%s2927_s0 + $0xa0] sm:$0xf]  ;;  %v1398_v53 = vor.u32 %v1702_v50, %v1397_v49  ;;  %v1705_v59 = vld [vmem:[%s2927_s0 + $0xec] sm:$0xf0]  ;;  %v1407_v61 = vld [vmem:[%s2927_s0 + $0xf0] sm:$0xf0] }
  0x1d   :  { %v1413_v62 = vld [vmem:[%s2927_s0 + $0xe8] sm:$0xf]  ;;  %v1706_v63 = vld [vmem:[%s2927_s0 + $0xf4] sm:$0xf0]  ;;  %v1406_v0 = vor.u32 %v1705_v59, %v1405_v58  ;;  %v1421_v6 = vld [vmem:[%s2927_s0 + $0x100] sm:$0xf] }
  0x1e   :  { %738 = vmatpush.bf16.msra.mxu0 %v1739_v34  ;;  %v1697_v34 = vld [vmem:[%s2927_s0 + $0xac] sm:$0xf0]  ;;  %v1414_v2 = vor.u32 %v1706_v63, %v1413_v62  ;;  %v1707_v9 = vld [vmem:[%s2927_s0 + $0x104] sm:$0xf]  ;;  %v1423_v10 = vld [vmem:[%s2927_s0 + $0x110] sm:$0xf0] }
  0x1f   :  { %827 = vmatpush.bf16.msra.mxu1 %v1747_v35  ;;  %v1695_v35 = vld [vmem:[%s2927_s0 + $0xa4] sm:$0xf]  ;;  %v1374_v39 = vor.u32 %v1697_v34, %v1373_v33  ;;  %v1709_v7 = vld [vmem:[%s2927_s0 + $0x10c] sm:$0xf0]  ;;  %v1429_v11 = vld [vmem:[%s2927_s0 + $0x108] sm:$0xf]  ;;  %v1426_v14 = vor.u32 %v1707_v9, %v1423_v10 }
  0x20   :  { %916 = vmatpush.bf16.msra.mxu2 %v1755_v40  ;;  %v1378_v40 = vor.u32 %v1695_v35, %v1375_v36  ;;  %v1710_v12 = vld [vmem:[%s2927_s0 + $0x114] sm:$0xf0]  ;;  %v1422_v13 = vor.u32 %v1709_v7, %v1421_v6  ;;  %v1712_v18 = vld [vmem:[%s2927_s0 + $0x12c] sm:$0xf]  ;;  %v1447_v19 = vld [vmem:[%s2927_s0 + $0x138] sm:$0xf0] }
  0x21   :  { %739 = vmatmul.bf16.vlgmr.msra.gmra.mxu0 %v1294_v43  ;;  %v1399_v43 = vld [vmem:[%s2927_s0 + $0xd8] sm:$0xf0]  ;;  %v1450_v22 = vor.u32 %v1712_v18, %v1447_v19  ;;  %v1711_v33 = vld [vmem:[%s2927_s0 + $0x124] sm:$0xf]  ;;  %v1439_v34 = vld [vmem:[%s2927_s0 + $0x130] sm:$0xf0] }
  0x22   :  { %828 = vmatmul.bf16.vlgmr.msra.gmra.mxu1 %v1298_v44  ;;  %v1402_v44 = vor.u32 %v1700_v42, %v1399_v43  ;;  %v1445_v35 = vld [vmem:[%s2927_s0 + $0x128] sm:$0xf]  ;;  %v1714_v36 = vld [vmem:[%s2927_s0 + $0x134] sm:$0xf0]  ;;  %v1463_v49 = vld [vmem:[%s2927_s0 + $0x158] sm:$0xf0] }
  0x23   :  { %917 = vmatmul.bf16.vlgmr.msra.gmra.mxu2 %v1302_v45  ;;  %v1389_v45 = vld [vmem:[%s2927_s0 + $0xc0] sm:$0xf]  ;;  %v1461_v6 = vld [vmem:[%s2927_s0 + $0x148] sm:$0xf]  ;;  %v1718_v7 = vld [vmem:[%s2927_s0 + $0x154] sm:$0xf0] }
  0x24   :  { %v1390_v51 = vor.u32 %v1701_v46, %v1389_v45  ;;  %v2303_v46 = vld [vmem:[%s2928_s2] ss:$0 sm:$0xff] }
  0x25   :  { %v1453_v63 = vld [vmem:[%s2927_s0 + $0x140] sm:$0xf] }
  0x28   :  { %1660 = vmatmul.msk.bf16.gmra.mxu3 %vm675_vm2, %v1322_v48  ;;  %v1391_v48 = vld [vmem:[%s2927_s0 + $0xd0] sm:$0xf0] }
  0x29   :  { %v1394_v52 = vor.u32 %v1699_v47, %v1391_v48  ;;  %v1716_v48 = vld [vmem:[%s2927_s0 + $0x14c] sm:$0xf] }
  0x31   :  { %744 = vmatmul.bf16.gmra.mxu0 %v1310_v55  ;;  %v1415_v55 = vld [vmem:[%s2927_s0 + $0xf8] sm:$0xf0] }
  0x32   :  { %833 = vmatmul.bf16.gmra.mxu1 %v1314_v56  ;;  %v1772_v56 = vmov 0.0  }
  0x33   :  { %922 = vmatmul.bf16.gmra.mxu2 %v1318_v57  ;;  %20 = vst.msk [vmem:[%s2929_s3] sm:$0xff] %vm19_vm3, %v1772_v56  ;;  %v1418_v57 = vor.u32 %v1704_v54, %v1415_v55  ;;  %v1466_v54 = vor.u32 %v1716_v48, %v1463_v49 }
  0x34   :  { %21 = vst.msk [vmem:[%s2929_s3 + $0x8] sm:$0xff] %vm19_vm3, %v1772_v56 }
  0x35   :  { %22 = vst.msk [vmem:[%s2929_s3 + $0x10] sm:$0xff] %vm19_vm3, %v1772_v56 }
  0x36   :  { %23 = vst.msk [vmem:[%s2929_s3 + $0x18] sm:$0xff] %vm19_vm3, %v1772_v56 }
  0x37   :  { %24 = vst.msk [vmem:[%s2929_s3 + $0x20] sm:$0xff] %vm19_vm3, %v1772_v56 }
  0x38   :  { %1661 = vmatmul.msk.bf16.gmra.mxu3 %vm675_vm2, %v1338_v60  ;;  %25 = vst.msk [vmem:[%s2929_s3 + $0x28] sm:$0xff] %vm19_vm3, %v1772_v56  ;;  %v1703_v60 = vld [vmem:[%s2927_s0 + $0xe4] sm:$0xf] }
  0x39   :  { %26 = vst.msk [vmem:[%s2929_s3 + $0x30] sm:$0xff] %vm19_vm3, %v1772_v56  ;;  %v1410_v1 = vor.u32 %v1703_v60, %v1407_v61 }
  0x3a   :  { %27 = vst.msk [vmem:[%s2929_s3 + $0x38] sm:$0xff] %vm19_vm3, %v1772_v56 }
  0x3b   :  { %28 = vst.msk [vmem:[%s2929_s3 + $0x40] sm:$0xff] %vm19_vm3, %v1772_v56  ;;  %v53_v45 = vld [vmem:[%s2929_s3 + $0x8] sm:$0xff] }
  0x3c   :  { %29 = vst.msk [vmem:[%s2929_s3 + $0x48] sm:$0xff] %vm19_vm3, %v1772_v56  ;;  %v54_v61 = vld [vmem:[%s2929_s3 + $0x10] sm:$0xff] }
  0x3d   :  { %30 = vst.msk [vmem:[%s2929_s3 + $0x50] sm:$0xff] %vm19_vm3, %v1772_v56  ;;  %v55_v18 = vld [vmem:[%s2929_s3 + $0x18] sm:$0xff] }
  0x3e   :  { %31 = vst.msk [vmem:[%s2929_s3 + $0x58] sm:$0xff] %vm19_vm3, %v1772_v56 }
  0x3f   :  { %32 = vst.msk [vmem:[%s2929_s3 + $0x60] sm:$0xff] %vm19_vm3, %v1772_v56 }
  0x40   :  { %33 = vst.msk [vmem:[%s2929_s3 + $0x68] sm:$0xff] %vm19_vm3, %v1772_v56 }
  0x41   :  { %749 = vmatmul.bf16.gmra.mxu0 %v1326_v3  ;;  %v1708_v3 = vld [vmem:[%s2927_s0 + $0x10c] sm:$0xf]  ;;  %34 = vst.msk [vmem:[%s2929_s3 + $0x70] sm:$0xff] %vm19_vm3, %v1772_v56 }
  0x42   :  { %838 = vmatmul.bf16.gmra.mxu1 %v1330_v4  ;;  %v1431_v4 = vld [vmem:[%s2927_s0 + $0x118] sm:$0xf0]  ;;  %35 = vst.msk [vmem:[%s2929_s3 + $0x78] sm:$0xff] %vm19_vm3, %v1772_v56 }
  0x43   :  { %927 = vmatmul.bf16.gmra.mxu2 %v1334_v5  ;;  %36 = vst.msk [vmem:[%s2929_s3 + $0x80] sm:$0xff] %vm19_vm3, %v1772_v56  ;;  %v1434_v5 = vor.u32 %v1708_v3, %v1431_v4  ;;  %v1715_v3 = vld [vmem:[%s2927_s0 + $0x144] sm:$0xf]  ;;  %v1455_v4 = vld [vmem:[%s2927_s0 + $0x150] sm:$0xf0] }
  0x44   :  { %37 = vst.msk [vmem:[%s2929_s3 + $0x88] sm:$0xff] %vm19_vm3, %v1772_v56 }
  0x45   :  { %38 = vst.msk [vmem:[%s2929_s3 + $0x90] sm:$0xff] %vm19_vm3, %v1772_v56 }
  0x46   :  { %39 = vst.msk [vmem:[%s2929_s3 + $0x98] sm:$0xff] %vm19_vm3, %v1772_v56 }
  0x47   :  { %40 = vst.msk [vmem:[%s2929_s3 + $0xa0] sm:$0xff] %vm19_vm3, %v1772_v56 }
  0x48   :  { %1662 = vmatmul.msk.bf16.gmra.mxu3 %vm675_vm2, %v1354_v8  ;;  %41 = vst.msk [vmem:[%s2929_s3 + $0xa8] sm:$0xff] %vm19_vm3, %v1772_v56 }
  0x49   :  { %42 = vst.msk [vmem:[%s2929_s3 + $0xb0] sm:$0xff] %vm19_vm3, %v1772_v56 }
  0x4a   :  { %43 = vst.msk [vmem:[%s2929_s3 + $0xb8] sm:$0xff] %vm19_vm3, %v1772_v56 }
  0x4b   :  { %44 = vst.msk [vmem:[%s2929_s3 + $0xc0] sm:$0xff] %vm19_vm3, %v1772_v56 }
  0x4c   :  { %45 = vst.msk [vmem:[%s2929_s3 + $0xc8] sm:$0xff] %vm19_vm3, %v1772_v56 }
  0x4d   :  { %46 = vst.msk [vmem:[%s2929_s3 + $0xd0] sm:$0xff] %vm19_vm3, %v1772_v56 }
  0x4e   :  { %47 = vst.msk [vmem:[%s2929_s3 + $0xd8] sm:$0xff] %vm19_vm3, %v1772_v56 }
  0x4f   :  { %48 = vst.msk [vmem:[%s2929_s3 + $0xe0] sm:$0xff] %vm19_vm3, %v1772_v56 }
  0x50   :  { %49 = vst.msk [vmem:[%s2929_s3 + $0xe8] sm:$0xff] %vm19_vm3, %v1772_v56 }
  0x51   :  { %754 = vmatmul.bf16.gmra.mxu0 %v1342_v15  ;;  %50 = vst.msk [vmem:[%s2929_s3 + $0xf0] sm:$0xff] %vm19_vm3, %v1772_v56 }
  0x52   :  { %843 = vmatmul.bf16.gmra.mxu1 %v1346_v16  ;;  %51 = vst.msk [vmem:[%s2929_s3 + $0xf8] sm:$0xff] %vm19_vm3, %v1772_v56 }
  0x53   :  { %932 = vmatmul.bf16.gmra.mxu2 %v1350_v17  ;;  %v1430_v17 = vor.u32 %v1710_v12, %v1429_v11  ;;  %v1458_v12 = vor.u32 %v1715_v3, %v1455_v4 }
  0x58   :  { %1663 = vmatmul.msk.bf16.gmra.mxu3 %vm675_vm2, %v1370_v20 }
  0x61   :  { %759 = vmatmul.bf16.gmra.mxu0 %v1358_v27  ;;  %v52_v27 = vld [vmem:[%s2929_s3] sm:$0xff] }
  0x62   :  { %848 = vmatmul.bf16.gmra.mxu1 %v1362_v28 }
  0x63   :  { %937 = vmatmul.bf16.gmra.mxu2 %v1366_v29  ;;  %v1437_v29 = vld [vmem:[%s2927_s0 + $0x120] sm:$0xf] }
  0x68   :  { %1664 = vmatmul.msk.bf16.gmra.mxu3 %vm675_vm2, %v1386_v32  ;;  %v1713_v32 = vld [vmem:[%s2927_s0 + $0x12c] sm:$0xf0] }
  0x71   :  { %764 = vmatmul.bf16.gmra.mxu0 %v1374_v39  ;;  %v1438_v39 = vor.u32 %v1713_v32, %v1437_v29 }
  0x72   :  { %853 = vmatmul.bf16.gmra.mxu1 %v1378_v40  ;;  %v1442_v40 = vor.u32 %v1711_v33, %v1439_v34  ;;  %v56_v33 = vld [vmem:[%s2929_s3 + $0x20] sm:$0xff] }
  0x73   :  { %942 = vmatmul.bf16.gmra.mxu2 %v1382_v41 }
  0x78   :  { %1665 = vmatmul.msk.bf16.gmra.mxu3 %vm675_vm2, %v1402_v44  ;;  %v1446_v44 = vor.u32 %v1714_v36, %v1445_v35  ;;  %v1469_v35 = vld [vmem:[%s2927_s0 + $0x160] sm:$0xf] }
  0x81   :  { %769 = vmatmul.bf16.gmra.mxu0 %v1390_v51 }
  0x82   :  { %858 = vmatmul.bf16.gmra.mxu1 %v1394_v52 }
  0x83   :  { %947 = vmatmul.bf16.gmra.mxu2 %v1398_v53 }
  0x88   :  { %1666 = vmatmul.msk.bf16.gmra.mxu3 %vm675_vm2, %v1418_v57 }
  0x91   :  { %774 = vmatmul.bf16.gmra.mxu0 %v1406_v0 }
  0x92   :  { %863 = vmatmul.bf16.gmra.mxu1 %v1410_v1 }
  0x93   :  { %952 = vmatmul.bf16.gmra.mxu2 %v1414_v2  ;;  %v1717_v2 = vld [vmem:[%s2927_s0 + $0x14c] sm:$0xf0] }
  0x94   :  { %v1454_v11 = vor.u32 %v1717_v2, %v1453_v63 }
  0x98   :  { %1667 = vmatmul.msk.bf16.gmra.mxu3 %vm675_vm2, %v1434_v5 }
  0x9b   :  { %v1007_v8 = vpop.f32.mrf.mxu3 }
  0x9e   :  { %v740_v15 = vpop.f32.mrf.mxu0 }
  0x9f   :  { %v829_v16 = vpop.f32.mrf.mxu1 }
  0xa0   :  { %v830_v20 = vadd.f32 %v829_v16, %v740_v15 }
  0xa1   :  { %779 = vmatmul.bf16.gmra.mxu0 %v1422_v13 }
  0xa2   :  { %868 = vmatmul.bf16.gmra.mxu1 %v1426_v14 }
  0xa3   :  { %957 = vmatmul.bf16.gmra.mxu2 %v1430_v17  ;;  %v1009_v21 = vpop.f32.mrf.mxu3  ;;  %v1462_v17 = vor.u32 %v1718_v7, %v1461_v6  ;;  %v58_v6 = vld [vmem:[%s2929_s3 + $0x30] sm:$0xff] }
  0xa6   :  { %v918_v23 = vpop.f32.mrf.mxu2  ;;  %v742_v25 = vpop.f32.mrf.mxu0 }
  0xa7   :  { %v919_v24 = vadd.f32 %v918_v23, %v830_v20  ;;  %v831_v26 = vpop.f32.mrf.mxu1  ;;  %v1720_v20 = vld [vmem:[%s2927_s0 + $0x16c] sm:$0xf] }
  0xa8   :  { %1668 = vmatmul.msk.bf16.gmra.mxu3 %vm675_vm2, %v1450_v22  ;;  %v832_v37 = vadd.f32 %v831_v26, %v742_v25 }
  0xa9   :  { %v1008_v28 = vadd.f32 %v1007_v8, %v919_v24 }
  0xab   :  { %v1087_v30 = vadd.f32 %v1008_v28, %v52_v27  ;;  %v1012_v31 = vpop.f32.mrf.mxu3 }
  0xad   :  { %1120 = vst.msk [vmem:[%s2929_s3] sm:$0xff] %vm19_vm3, %v1087_v30 }
  0xae   :  { %v920_v38 = vpop.f32.mrf.mxu2  ;;  %v745_v42 = vpop.f32.mrf.mxu0 }
  0xaf   :  { %v921_v41 = vadd.f32 %v920_v38, %v832_v37  ;;  %v834_v43 = vpop.f32.mrf.mxu1  ;;  %v1721_v38 = vld [vmem:[%s2927_s0 + $0x16c] sm:$0xf0] }
  0xb0   :  { %v835_v51 = vadd.f32 %v834_v43, %v745_v42  ;;  %v1477_v42 = vld [vmem:[%s2927_s0 + $0x168] sm:$0xf]  ;;  %v1722_v43 = vld [vmem:[%s2927_s0 + $0x174] sm:$0xf0]  ;;  %v1470_v48 = vor.u32 %v1721_v38, %v1469_v35 }
  0xb1   :  { %v1010_v47 = vadd.f32 %v1009_v21, %v921_v41  ;;  %784 = vmatmul.bf16.gmra.mxu0 %v1438_v39  ;;  %v1479_v21 = vld [vmem:[%s2927_s0 + $0x178] sm:$0xf0]  ;;  %v1719_v39 = vld [vmem:[%s2927_s0 + $0x164] sm:$0xf] }
  0xb2   :  { %873 = vmatmul.bf16.gmra.mxu1 %v1442_v40  ;;  %v1482_v26 = vor.u32 %v1720_v20, %v1479_v21  ;;  %v1471_v40 = vld [vmem:[%s2927_s0 + $0x170] sm:$0xf0] }
  0xb3   :  { %v1088_v50 = vadd.f32 %v1010_v47, %v53_v45  ;;  %962 = vmatmul.bf16.gmra.mxu2 %v1446_v44  ;;  %v1014_v52 = vpop.f32.mrf.mxu3  ;;  %v1474_v49 = vor.u32 %v1719_v39, %v1471_v40 }
  0xb4   :  { %v1155_v53 = vld [vmem:[%s2929_s3] sm:$0xff] }
  0xb5   :  { %v1191_v55 = vadd.f32 %v2303_v46, %v1155_v53  ;;  %1121 = vst.msk [vmem:[%s2929_s3 + $0x8] sm:$0xff] %vm19_vm3, %v1088_v50 }
  0xb6   :  { %v923_v56 = vpop.f32.mrf.mxu2  ;;  %v747_v59 = vpop.f32.mrf.mxu0 }
  0xb7   :  { %v1223_v57 = vmax.f32 %v1191_v55, 0.0  ;;  %v924_v58 = vadd.f32 %v923_v56, %v835_v51  ;;  %v836_v60 = vpop.f32.mrf.mxu1  ;;  %v57_v55 = vld [vmem:[%s2929_s3 + $0x28] sm:$0xff] }
  0xb8   :  { %1669 = vmatmul.msk.bf16.gmra.mxu3 %vm675_vm2, %v1466_v54  ;;  %v837_v9 = vadd.f32 %v836_v60, %v747_v59  ;;  %v1478_v54 = vor.u32 %v1722_v43, %v1477_v42  ;;  %v60_v42 = vld [vmem:[%s2929_s3 + $0x40] sm:$0xff] }
  0xb9   :  { %1255 = vst.msk [vmem:[%s2929_s3] sm:$0xff] %vm19_vm3, %v1223_v57  ;;  %v1013_v62 = vadd.f32 %v1012_v31, %v924_v58  ;;  %v1724_v57 = vld [vmem:[%s2927_s0 + $0x18c] sm:$0xf]  ;;  %v1495_v58 = vld [vmem:[%s2927_s0 + $0x198] sm:$0xf0] }
  0xba   :  { %v1498_v63 = vor.u32 %v1724_v57, %v1495_v58 }
  0xbb   :  { %v1089_v0 = vadd.f32 %v1013_v62, %v54_v61  ;;  %v1017_v1 = vpop.f32.mrf.mxu3 }
  0xbc   :  { %v1156_v5 = vld [vmem:[%s2929_s3 + $0x8] sm:$0xff] }
  0xbd   :  { %v1192_v8 = vadd.f32 %v2303_v46, %v1156_v5  ;;  %1122 = vst.msk [vmem:[%s2929_s3 + $0x10] sm:$0xff] %vm19_vm3, %v1089_v0 }
  0xbe   :  { %v925_v10 = vpop.f32.mrf.mxu2  ;;  %v750_v15 = vpop.f32.mrf.mxu0 }
  0xbf   :  { %v1224_v13 = vmax.f32 %v1192_v8, 0.0  ;;  %v926_v14 = vadd.f32 %v925_v10, %v837_v9  ;;  %v839_v16 = vpop.f32.mrf.mxu1  ;;  %v1485_v8 = vld [vmem:[%s2927_s0 + $0x180] sm:$0xf] }
  0xc0   :  { %v840_v23 = vadd.f32 %v839_v16, %v750_v15  ;;  %v1493_v15 = vld [vmem:[%s2927_s0 + $0x188] sm:$0xf]  ;;  %v1726_v16 = vld [vmem:[%s2927_s0 + $0x194] sm:$0xf0] }
  0xc1   :  { %1256 = vst.msk [vmem:[%s2929_s3 + $0x8] sm:$0xff] %vm19_vm3, %v1224_v13  ;;  %v1015_v19 = vadd.f32 %v1014_v52, %v926_v14  ;;  %789 = vmatmul.bf16.gmra.mxu0 %v1454_v11  ;;  %v1725_v11 = vld [vmem:[%s2927_s0 + $0x18c] sm:$0xf0]  ;;  %v1487_v13 = vld [vmem:[%s2927_s0 + $0x190] sm:$0xf0] }
  0xc2   :  { %878 = vmatmul.bf16.gmra.mxu1 %v1458_v12  ;;  %v1723_v12 = vld [vmem:[%s2927_s0 + $0x184] sm:$0xf]  ;;  %v1486_v20 = vor.u32 %v1725_v11, %v1485_v8 }
  0xc3   :  { %v1090_v22 = vadd.f32 %v1015_v19, %v55_v18  ;;  %967 = vmatmul.bf16.gmra.mxu2 %v1462_v17  ;;  %v1019_v24 = vpop.f32.mrf.mxu3  ;;  %v1490_v21 = vor.u32 %v1723_v12, %v1487_v13 }
  0xc4   :  { %v1157_v25 = vld [vmem:[%s2929_s3 + $0x10] sm:$0xff] }
  0xc5   :  { %v1193_v27 = vadd.f32 %v2303_v46, %v1157_v25  ;;  %1123 = vst.msk [vmem:[%s2929_s3 + $0x18] sm:$0xff] %vm19_vm3, %v1090_v22 }
  0xc6   :  { %v928_v28 = vpop.f32.mrf.mxu2  ;;  %v752_v31 = vpop.f32.mrf.mxu0 }
  0xc7   :  { %v1225_v29 = vmax.f32 %v1193_v27, 0.0  ;;  %v929_v30 = vadd.f32 %v928_v28, %v840_v23  ;;  %v841_v32 = vpop.f32.mrf.mxu1  ;;  %v59_v27 = vld [vmem:[%s2929_s3 + $0x38] sm:$0xff] }
  0xc8   :  { %1670 = vmatmul.msk.bf16.gmra.mxu3 %vm675_vm2, %v1482_v26  ;;  %v842_v45 = vadd.f32 %v841_v32, %v752_v31  ;;  %v1494_v26 = vor.u32 %v1726_v16, %v1493_v15  ;;  %v62_v15 = vld [vmem:[%s2929_s3 + $0x50] sm:$0xff] }
  0xc9   :  { %1257 = vst.msk [vmem:[%s2929_s3 + $0x10] sm:$0xff] %vm19_vm3, %v1225_v29  ;;  %v1018_v34 = vadd.f32 %v1017_v1, %v929_v30  ;;  %v1728_v29 = vld [vmem:[%s2927_s0 + $0x1ac] sm:$0xf]  ;;  %v1511_v30 = vld [vmem:[%s2927_s0 + $0x1b8] sm:$0xf0] }
  0xca   :  { %v1514_v35 = vor.u32 %v1728_v29, %v1511_v30 }
  0xcb   :  { %v1091_v36 = vadd.f32 %v1018_v34, %v56_v33  ;;  %v1022_v37 = vpop.f32.mrf.mxu3 }
  0xcc   :  { %v1158_v41 = vld [vmem:[%s2929_s3 + $0x18] sm:$0xff] }
  0xcd   :  { %v1194_v44 = vadd.f32 %v2303_v46, %v1158_v41  ;;  %1124 = vst.msk [vmem:[%s2929_s3 + $0x20] sm:$0xff] %vm19_vm3, %v1091_v36 }
  0xce   :  { %v930_v47 = vpop.f32.mrf.mxu2  ;;  %v755_v52 = vpop.f32.mrf.mxu0 }
  0xcf   :  { %v1226_v50 = vmax.f32 %v1194_v44, 0.0  ;;  %v931_v51 = vadd.f32 %v930_v47, %v842_v45  ;;  %v844_v53 = vpop.f32.mrf.mxu1  ;;  %v1501_v44 = vld [vmem:[%s2927_s0 + $0x1a0] sm:$0xf] }
  0xd0   :  { %v845_v60 = vadd.f32 %v844_v53, %v755_v52  ;;  %v1509_v52 = vld [vmem:[%s2927_s0 + $0x1a8] sm:$0xf]  ;;  %v1730_v53 = vld [vmem:[%s2927_s0 + $0x1b4] sm:$0xf0] }
  0xd1   :  { %1258 = vst.msk [vmem:[%s2929_s3 + $0x18] sm:$0xff] %vm19_vm3, %v1226_v50  ;;  %v1020_v56 = vadd.f32 %v1019_v24, %v931_v51  ;;  %794 = vmatmul.bf16.gmra.mxu0 %v1470_v48  ;;  %v1729_v48 = vld [vmem:[%s2927_s0 + $0x1ac] sm:$0xf0]  ;;  %v1503_v50 = vld [vmem:[%s2927_s0 + $0x1b0] sm:$0xf0] }
  0xd2   :  { %883 = vmatmul.bf16.gmra.mxu1 %v1474_v49  ;;  %v1727_v49 = vld [vmem:[%s2927_s0 + $0x1a4] sm:$0xf]  ;;  %v1502_v57 = vor.u32 %v1729_v48, %v1501_v44 }
  0xd3   :  { %v1092_v59 = vadd.f32 %v1020_v56, %v57_v55  ;;  %972 = vmatmul.bf16.gmra.mxu2 %v1478_v54  ;;  %v1024_v61 = vpop.f32.mrf.mxu3  ;;  %v1506_v58 = vor.u32 %v1727_v49, %v1503_v50 }
  0xd4   :  { %v1159_v62 = vld [vmem:[%s2929_s3 + $0x20] sm:$0xff] }
  0xd5   :  { %v1195_v0 = vadd.f32 %v2303_v46, %v1159_v62  ;;  %1125 = vst.msk [vmem:[%s2929_s3 + $0x28] sm:$0xff] %vm19_vm3, %v1092_v59 }
  0xd6   :  { %v933_v1 = vpop.f32.mrf.mxu2  ;;  %v757_v4 = vpop.f32.mrf.mxu0 }
  0xd7   :  { %v1227_v2 = vmax.f32 %v1195_v0, 0.0  ;;  %v934_v3 = vadd.f32 %v933_v1, %v845_v60  ;;  %v846_v5 = vpop.f32.mrf.mxu1  ;;  %v61_v0 = vld [vmem:[%s2929_s3 + $0x48] sm:$0xff] }
  0xd8   :  { %1671 = vmatmul.msk.bf16.gmra.mxu3 %vm675_vm2, %v1498_v63  ;;  %v847_v18 = vadd.f32 %v846_v5, %v757_v4  ;;  %v1510_v63 = vor.u32 %v1730_v53, %v1509_v52  ;;  %v64_v52 = vld [vmem:[%s2929_s3 + $0x60] sm:$0xff] }
  0xd9   :  { %1259 = vst.msk [vmem:[%s2929_s3 + $0x20] sm:$0xff] %vm19_vm3, %v1227_v2  ;;  %v1023_v7 = vadd.f32 %v1022_v37, %v934_v3  ;;  %v1732_v2 = vld [vmem:[%s2927_s0 + $0x1cc] sm:$0xf]  ;;  %v1527_v3 = vld [vmem:[%s2927_s0 + $0x1d8] sm:$0xf0] }
  0xda   :  { %v1530_v8 = vor.u32 %v1732_v2, %v1527_v3 }
  0xdb   :  { %v1093_v9 = vadd.f32 %v1023_v7, %v58_v6  ;;  %v1027_v10 = vpop.f32.mrf.mxu3 }
  0xdc   :  { %v1160_v14 = vld [vmem:[%s2929_s3 + $0x28] sm:$0xff] }
  0xdd   :  { %v1196_v17 = vadd.f32 %v2303_v46, %v1160_v14  ;;  %1126 = vst.msk [vmem:[%s2929_s3 + $0x30] sm:$0xff] %vm19_vm3, %v1093_v9 }
  0xde   :  { %v935_v19 = vpop.f32.mrf.mxu2  ;;  %v760_v24 = vpop.f32.mrf.mxu0 }
  0xdf   :  { %v1228_v22 = vmax.f32 %v1196_v17, 0.0  ;;  %v936_v23 = vadd.f32 %v935_v19, %v847_v18  ;;  %v849_v25 = vpop.f32.mrf.mxu1  ;;  %v1517_v17 = vld [vmem:[%s2927_s0 + $0x1c0] sm:$0xf] }
  0xe0   :  { %v850_v32 = vadd.f32 %v849_v25, %v760_v24  ;;  %v1525_v24 = vld [vmem:[%s2927_s0 + $0x1c8] sm:$0xf]  ;;  %v1734_v25 = vld [vmem:[%s2927_s0 + $0x1d4] sm:$0xf0] }
  0xe1   :  { %1260 = vst.msk [vmem:[%s2929_s3 + $0x28] sm:$0xff] %vm19_vm3, %v1228_v22  ;;  %v1025_v28 = vadd.f32 %v1024_v61, %v936_v23  ;;  %799 = vmatmul.bf16.gmra.mxu0 %v1486_v20  ;;  %v1733_v20 = vld [vmem:[%s2927_s0 + $0x1cc] sm:$0xf0]  ;;  %v1519_v22 = vld [vmem:[%s2927_s0 + $0x1d0] sm:$0xf0] }
  0xe2   :  { %888 = vmatmul.bf16.gmra.mxu1 %v1490_v21  ;;  %v1731_v21 = vld [vmem:[%s2927_s0 + $0x1c4] sm:$0xf]  ;;  %v1518_v29 = vor.u32 %v1733_v20, %v1517_v17 }
  0xe3   :  { %v1094_v31 = vadd.f32 %v1025_v28, %v59_v27  ;;  %977 = vmatmul.bf16.gmra.mxu2 %v1494_v26  ;;  %v1029_v33 = vpop.f32.mrf.mxu3  ;;  %v1522_v30 = vor.u32 %v1731_v21, %v1519_v22  ;;  %v66_v21 = vld [vmem:[%s2929_s3 + $0x70] sm:$0xff] }
  0xe4   :  { %v1161_v34 = vld [vmem:[%s2929_s3 + $0x30] sm:$0xff] }
  0xe5   :  { %v1197_v36 = vadd.f32 %v2303_v46, %v1161_v34  ;;  %1127 = vst.msk [vmem:[%s2929_s3 + $0x38] sm:$0xff] %vm19_vm3, %v1094_v31 }
  0xe6   :  { %v938_v37 = vpop.f32.mrf.mxu2  ;;  %v762_v40 = vpop.f32.mrf.mxu0 }
  0xe7   :  { %v1229_v38 = vmax.f32 %v1197_v36, 0.0  ;;  %v939_v39 = vadd.f32 %v938_v37, %v850_v32  ;;  %v851_v41 = vpop.f32.mrf.mxu1  ;;  %v63_v36 = vld [vmem:[%s2929_s3 + $0x58] sm:$0xff] }
  0xe8   :  { %1672 = vmatmul.msk.bf16.gmra.mxu3 %vm675_vm2, %v1514_v35  ;;  %v852_v55 = vadd.f32 %v851_v41, %v762_v40  ;;  %v1526_v35 = vor.u32 %v1734_v25, %v1525_v24 }
  0xe9   :  { %1261 = vst.msk [vmem:[%s2929_s3 + $0x30] sm:$0xff] %vm19_vm3, %v1229_v38  ;;  %v1028_v43 = vadd.f32 %v1027_v10, %v939_v39  ;;  %v1736_v38 = vld [vmem:[%s2927_s0 + $0x1ec] sm:$0xf]  ;;  %v1543_v39 = vld [vmem:[%s2927_s0 + $0x1f8] sm:$0xf0] }
  0xea   :  { %v1546_v44 = vor.u32 %v1736_v38, %v1543_v39 }
  0xeb   :  { %v1095_v45 = vadd.f32 %v1028_v43, %v60_v42  ;;  %v1032_v47 = vpop.f32.mrf.mxu3 }
  0xec   :  { %v1162_v51 = vld [vmem:[%s2929_s3 + $0x38] sm:$0xff] }
  0xed   :  { %v1198_v54 = vadd.f32 %v2303_v46, %v1162_v51  ;;  %1128 = vst.msk [vmem:[%s2929_s3 + $0x40] sm:$0xff] %vm19_vm3, %v1095_v45 }
  0xee   :  { %v940_v56 = vpop.f32.mrf.mxu2  ;;  %v765_v61 = vpop.f32.mrf.mxu0 }
  0xef   :  { %v1230_v59 = vmax.f32 %v1198_v54, 0.0  ;;  %v941_v60 = vadd.f32 %v940_v56, %v852_v55  ;;  %v854_v62 = vpop.f32.mrf.mxu1  ;;  %v1533_v54 = vld [vmem:[%s2927_s0 + $0x1e0] sm:$0xf] }
  0xf0   :  { %v855_v5 = vadd.f32 %v854_v62, %v765_v61  ;;  %v1541_v61 = vld [vmem:[%s2927_s0 + $0x1e8] sm:$0xf]  ;;  %v1738_v62 = vld [vmem:[%s2927_s0 + $0x1f4] sm:$0xf0] }
  0xf1   :  { %1262 = vst.msk [vmem:[%s2929_s3 + $0x38] sm:$0xff] %vm19_vm3, %v1230_v59  ;;  %v1030_v1 = vadd.f32 %v1029_v33, %v941_v60  ;;  %804 = vmatmul.bf16.gmra.mxu0 %v1502_v57  ;;  %v1737_v57 = vld [vmem:[%s2927_s0 + $0x1ec] sm:$0xf0]  ;;  %v1535_v59 = vld [vmem:[%s2927_s0 + $0x1f0] sm:$0xf0] }
  0xf2   :  { %893 = vmatmul.bf16.gmra.mxu1 %v1506_v58  ;;  %v1735_v58 = vld [vmem:[%s2927_s0 + $0x1e4] sm:$0xf]  ;;  %v1534_v2 = vor.u32 %v1737_v57, %v1533_v54 }
  0xf3   :  { %v1096_v4 = vadd.f32 %v1030_v1, %v61_v0  ;;  %982 = vmatmul.bf16.gmra.mxu2 %v1510_v63  ;;  %v1034_v6 = vpop.f32.mrf.mxu3  ;;  %v1538_v3 = vor.u32 %v1735_v58, %v1535_v59  ;;  %v69_v58 = vld [vmem:[%s2929_s3 + $0x88] sm:$0xff] }
  0xf4   :  { %v1163_v7 = vld [vmem:[%s2929_s3 + $0x40] sm:$0xff] }
  0xf5   :  { %v1199_v9 = vadd.f32 %v2303_v46, %v1163_v7  ;;  %1129 = vst.msk [vmem:[%s2929_s3 + $0x48] sm:$0xff] %vm19_vm3, %v1096_v4 }
  0xf6   :  { %v943_v10 = vpop.f32.mrf.mxu2  ;;  %v767_v13 = vpop.f32.mrf.mxu0 }
  0xf7   :  { %v1231_v11 = vmax.f32 %v1199_v9, 0.0  ;;  %v944_v12 = vadd.f32 %v943_v10, %v855_v5  ;;  %v856_v14 = vpop.f32.mrf.mxu1  ;;  %v65_v9 = vld [vmem:[%s2929_s3 + $0x68] sm:$0xff] }
  0xf8   :  { %1673 = vmatmul.msk.bf16.gmra.mxu3 %vm675_vm2, %v1530_v8  ;;  %v857_v27 = vadd.f32 %v856_v14, %v767_v13  ;;  %v1542_v8 = vor.u32 %v1738_v62, %v1541_v61 }
  0xf9   :  { %1263 = vst.msk [vmem:[%s2929_s3 + $0x40] sm:$0xff] %vm19_vm3, %v1231_v11  ;;  %v1033_v16 = vadd.f32 %v1032_v47, %v944_v12 }
  0xfb   :  { %v1097_v18 = vadd.f32 %v1033_v16, %v62_v15  ;;  %v1037_v19 = vpop.f32.mrf.mxu3 }
  0xfc   :  { %v1164_v23 = vld [vmem:[%s2929_s3 + $0x48] sm:$0xff] }
  0xfd   :  { %v1200_v26 = vadd.f32 %v2303_v46, %v1164_v23  ;;  %1130 = vst.msk [vmem:[%s2929_s3 + $0x50] sm:$0xff] %vm19_vm3, %v1097_v18 }
  0xfe   :  { %v945_v28 = vpop.f32.mrf.mxu2  ;;  %v770_v33 = vpop.f32.mrf.mxu0 }
  0xff   :  { %v1232_v31 = vmax.f32 %v1200_v26, 0.0  ;;  %v946_v32 = vadd.f32 %v945_v28, %v857_v27  ;;  %v859_v34 = vpop.f32.mrf.mxu1 }
 0x100   :  { %v860_v41 = vadd.f32 %v859_v34, %v770_v33  ;;  %v67_v33 = vld [vmem:[%s2929_s3 + $0x78] sm:$0xff] }
 0x101   :  { %1264 = vst.msk [vmem:[%s2929_s3 + $0x48] sm:$0xff] %vm19_vm3, %v1232_v31  ;;  %v1035_v37 = vadd.f32 %v1034_v6, %v946_v32  ;;  %809 = vmatmul.bf16.gmra.mxu0 %v1518_v29 }
 0x102   :  { %898 = vmatmul.bf16.gmra.mxu1 %v1522_v30 }
 0x103   :  { %v1098_v40 = vadd.f32 %v1035_v37, %v63_v36  ;;  %987 = vmatmul.bf16.gmra.mxu2 %v1526_v35  ;;  %v1039_v42 = vpop.f32.mrf.mxu3 }
 0x104   :  { %v1165_v43 = vld [vmem:[%s2929_s3 + $0x50] sm:$0xff] }
 0x105   :  { %v1201_v45 = vadd.f32 %v2303_v46, %v1165_v43  ;;  %1131 = vst.msk [vmem:[%s2929_s3 + $0x58] sm:$0xff] %vm19_vm3, %v1098_v40 }
 0x106   :  { %v948_v47 = vpop.f32.mrf.mxu2  ;;  %v772_v50 = vpop.f32.mrf.mxu0 }
 0x107   :  { %v1233_v48 = vmax.f32 %v1201_v45, 0.0  ;;  %v949_v49 = vadd.f32 %v948_v47, %v860_v41  ;;  %v861_v51 = vpop.f32.mrf.mxu1  ;;  %v68_v45 = vld [vmem:[%s2929_s3 + $0x80] sm:$0xff] }
 0x108   :  { %1674 = vmatmul.msk.bf16.gmra.mxu3 %vm675_vm2, %v1546_v44  ;;  %v862_v0 = vadd.f32 %v861_v51, %v772_v50 }
 0x109   :  { %1265 = vst.msk [vmem:[%s2929_s3 + $0x50] sm:$0xff] %vm19_vm3, %v1233_v48  ;;  %v1038_v53 = vadd.f32 %v1037_v19, %v949_v49 }
 0x10b   :  { %v1099_v55 = vadd.f32 %v1038_v53, %v64_v52  ;;  %v1042_v56 = vpop.f32.mrf.mxu3 }
 0x10c   :  { %v1166_v60 = vld [vmem:[%s2929_s3 + $0x58] sm:$0xff] }
 0x10d   :  { %v1202_v63 = vadd.f32 %v2303_v46, %v1166_v60  ;;  %1132 = vst.msk [vmem:[%s2929_s3 + $0x60] sm:$0xff] %vm19_vm3, %v1099_v55 }
 0x10e   :  { %v950_v1 = vpop.f32.mrf.mxu2  ;;  %v775_v6 = vpop.f32.mrf.mxu0 }
 0x10f   :  { %v1234_v4 = vmax.f32 %v1202_v63, 0.0  ;;  %v951_v5 = vadd.f32 %v950_v1, %v862_v0  ;;  %v864_v7 = vpop.f32.mrf.mxu1 }
 0x110   :  { %v865_v12 = vadd.f32 %v864_v7, %v775_v6  ;;  %v70_v6 = vld [vmem:[%s2929_s3 + $0x90] sm:$0xff] }
 0x111   :  { %1266 = vst.msk [vmem:[%s2929_s3 + $0x58] sm:$0xff] %vm19_vm3, %v1234_v4  ;;  %v1040_v10 = vadd.f32 %v1039_v42, %v951_v5  ;;  %814 = vmatmul.bf16.gmra.mxu0 %v1534_v2 }
 0x112   :  { %903 = vmatmul.bf16.gmra.mxu1 %v1538_v3 }
 0x113   :  { %v1100_v11 = vadd.f32 %v1040_v10, %v65_v9  ;;  %992 = vmatmul.bf16.gmra.mxu2 %v1542_v8  ;;  %v1044_v13 = vpop.f32.mrf.mxu3 }
 0x114   :  { %v1167_v14 = vld [vmem:[%s2929_s3 + $0x60] sm:$0xff] }
 0x115   :  { %v1203_v15 = vadd.f32 %v2303_v46, %v1167_v14  ;;  %1133 = vst.msk [vmem:[%s2929_s3 + $0x68] sm:$0xff] %vm19_vm3, %v1100_v11 }
 0x116   :  { %v953_v16 = vpop.f32.mrf.mxu2  ;;  %v777_v19 = vpop.f32.mrf.mxu0 }
 0x117   :  { %v1235_v17 = vmax.f32 %v1203_v15, 0.0  ;;  %v954_v18 = vadd.f32 %v953_v16, %v865_v12  ;;  %v866_v20 = vpop.f32.mrf.mxu1 }
 0x118   :  { %v867_v27 = vadd.f32 %v866_v20, %v777_v19 }
 0x119   :  { %1267 = vst.msk [vmem:[%s2929_s3 + $0x60] sm:$0xff] %vm19_vm3, %v1235_v17  ;;  %v1043_v22 = vadd.f32 %v1042_v56, %v954_v18  ;;  %v71_v18 = vld [vmem:[%s2929_s3 + $0x98] sm:$0xff] }
 0x11b   :  { %v1101_v23 = vadd.f32 %v1043_v22, %v66_v21  ;;  %v1047_v24 = vpop.f32.mrf.mxu3 }
 0x11c   :  { %v1168_v25 = vld [vmem:[%s2929_s3 + $0x68] sm:$0xff] }
 0x11d   :  { %v1204_v26 = vadd.f32 %v2303_v46, %v1168_v25  ;;  %1134 = vst.msk [vmem:[%s2929_s3 + $0x70] sm:$0xff] %vm19_vm3, %v1101_v23 }
 0x11e   :  { %v955_v28 = vpop.f32.mrf.mxu2  ;;  %v780_v31 = vpop.f32.mrf.mxu0 }
 0x11f   :  { %v1236_v29 = vmax.f32 %v1204_v26, 0.0  ;;  %v956_v30 = vadd.f32 %v955_v28, %v867_v27  ;;  %v869_v32 = vpop.f32.mrf.mxu1 }
 0x120   :  { %v870_v36 = vadd.f32 %v869_v32, %v780_v31 }
 0x121   :  { %1268 = vst.msk [vmem:[%s2929_s3 + $0x68] sm:$0xff] %vm19_vm3, %v1236_v29  ;;  %v1045_v34 = vadd.f32 %v1044_v13, %v956_v30  ;;  %v72_v30 = vld [vmem:[%s2929_s3 + $0xa0] sm:$0xff] }
 0x123   :  { %v1102_v35 = vadd.f32 %v1045_v34, %v67_v33  ;;  %v1049_v37 = vpop.f32.mrf.mxu3 }
 0x124   :  { %v1169_v38 = vld [vmem:[%s2929_s3 + $0x70] sm:$0xff] }
 0x125   :  { %v1205_v39 = vadd.f32 %v2303_v46, %v1169_v38  ;;  %1135 = vst.msk [vmem:[%s2929_s3 + $0x78] sm:$0xff] %vm19_vm3, %v1102_v35 }
 0x126   :  { %v958_v40 = vpop.f32.mrf.mxu2  ;;  %v782_v43 = vpop.f32.mrf.mxu0 }
 0x127   :  { %v1237_v41 = vmax.f32 %v1205_v39, 0.0  ;;  %v959_v42 = vadd.f32 %v958_v40, %v870_v36  ;;  %v871_v44 = vpop.f32.mrf.mxu1 }
 0x128   :  { %v872_v52 = vadd.f32 %v871_v44, %v782_v43 }
 0x129   :  { %1269 = vst.msk [vmem:[%s2929_s3 + $0x70] sm:$0xff] %vm19_vm3, %v1237_v41  ;;  %v1048_v47 = vadd.f32 %v1047_v24, %v959_v42  ;;  %v73_v42 = vld [vmem:[%s2929_s3 + $0xa8] sm:$0xff] }
 0x12b   :  { %v1103_v48 = vadd.f32 %v1048_v47, %v68_v45  ;;  %v1052_v49 = vpop.f32.mrf.mxu3 }
 0x12c   :  { %v1170_v50 = vld [vmem:[%s2929_s3 + $0x78] sm:$0xff] }
 0x12d   :  { %v1206_v51 = vadd.f32 %v2303_v46, %v1170_v50  ;;  %1136 = vst.msk [vmem:[%s2929_s3 + $0x80] sm:$0xff] %vm19_vm3, %v1103_v48 }
 0x12e   :  { %v960_v53 = vpop.f32.mrf.mxu2  ;;  %v785_v56 = vpop.f32.mrf.mxu0 }
 0x12f   :  { %v1238_v54 = vmax.f32 %v1206_v51, 0.0  ;;  %v961_v55 = vadd.f32 %v960_v53, %v872_v52  ;;  %v874_v57 = vpop.f32.mrf.mxu1 }
 0x130   :  { %v875_v61 = vadd.f32 %v874_v57, %v785_v56 }
 0x131   :  { %1270 = vst.msk [vmem:[%s2929_s3 + $0x78] sm:$0xff] %vm19_vm3, %v1238_v54  ;;  %v1050_v59 = vadd.f32 %v1049_v37, %v961_v55  ;;  %v74_v55 = vld [vmem:[%s2929_s3 + $0xb0] sm:$0xff] }
 0x133   :  { %v1104_v60 = vadd.f32 %v1050_v59, %v69_v58  ;;  %v1054_v62 = vpop.f32.mrf.mxu3 }
 0x134   :  { %v1171_v63 = vld [vmem:[%s2929_s3 + $0x80] sm:$0xff] }
 0x135   :  { %v1207_v0 = vadd.f32 %v2303_v46, %v1171_v63  ;;  %1137 = vst.msk [vmem:[%s2929_s3 + $0x88] sm:$0xff] %vm19_vm3, %v1104_v60 }
 0x136   :  { %v963_v1 = vpop.f32.mrf.mxu2  ;;  %v787_v4 = vpop.f32.mrf.mxu0 }
 0x137   :  { %v1239_v2 = vmax.f32 %v1207_v0, 0.0  ;;  %v964_v3 = vadd.f32 %v963_v1, %v875_v61  ;;  %v876_v5 = vpop.f32.mrf.mxu1 }
 0x138   :  { %v877_v12 = vadd.f32 %v876_v5, %v787_v4 }
 0x139   :  { %1271 = vst.msk [vmem:[%s2929_s3 + $0x80] sm:$0xff] %vm19_vm3, %v1239_v2  ;;  %v1053_v7 = vadd.f32 %v1052_v49, %v964_v3  ;;  %v75_v3 = vld [vmem:[%s2929_s3 + $0xb8] sm:$0xff] }
 0x13b   :  { %v1105_v8 = vadd.f32 %v1053_v7, %v70_v6  ;;  %v1057_v9 = vpop.f32.mrf.mxu3 }
 0x13c   :  { %v1172_v10 = vld [vmem:[%s2929_s3 + $0x88] sm:$0xff] }
 0x13d   :  { %v1208_v11 = vadd.f32 %v2303_v46, %v1172_v10  ;;  %1138 = vst.msk [vmem:[%s2929_s3 + $0x90] sm:$0xff] %vm19_vm3, %v1105_v8 }
 0x13e   :  { %v965_v13 = vpop.f32.mrf.mxu2  ;;  %v790_v16 = vpop.f32.mrf.mxu0 }
 0x13f   :  { %v1240_v14 = vmax.f32 %v1208_v11, 0.0  ;;  %v966_v15 = vadd.f32 %v965_v13, %v877_v12  ;;  %v879_v17 = vpop.f32.mrf.mxu1 }
 0x140   :  { %v880_v21 = vadd.f32 %v879_v17, %v790_v16 }
 0x141   :  { %1272 = vst.msk [vmem:[%s2929_s3 + $0x88] sm:$0xff] %vm19_vm3, %v1240_v14  ;;  %v1055_v19 = vadd.f32 %v1054_v62, %v966_v15  ;;  %v76_v15 = vld [vmem:[%s2929_s3 + $0xc0] sm:$0xff] }
 0x143   :  { %v1106_v20 = vadd.f32 %v1055_v19, %v71_v18  ;;  %v1059_v22 = vpop.f32.mrf.mxu3 }
 0x144   :  { %v1173_v23 = vld [vmem:[%s2929_s3 + $0x90] sm:$0xff] }
 0x145   :  { %v1209_v24 = vadd.f32 %v2303_v46, %v1173_v23  ;;  %1139 = vst.msk [vmem:[%s2929_s3 + $0x98] sm:$0xff] %vm19_vm3, %v1106_v20 }
 0x146   :  { %v968_v25 = vpop.f32.mrf.mxu2  ;;  %v792_v28 = vpop.f32.mrf.mxu0 }
 0x147   :  { %v1241_v26 = vmax.f32 %v1209_v24, 0.0  ;;  %v969_v27 = vadd.f32 %v968_v25, %v880_v21  ;;  %v881_v29 = vpop.f32.mrf.mxu1 }
 0x148   :  { %v882_v36 = vadd.f32 %v881_v29, %v792_v28 }
 0x149   :  { %1273 = vst.msk [vmem:[%s2929_s3 + $0x90] sm:$0xff] %vm19_vm3, %v1241_v26  ;;  %v1058_v31 = vadd.f32 %v1057_v9, %v969_v27  ;;  %v77_v27 = vld [vmem:[%s2929_s3 + $0xc8] sm:$0xff] }
 0x14b   :  { %v1107_v32 = vadd.f32 %v1058_v31, %v72_v30  ;;  %v1062_v33 = vpop.f32.mrf.mxu3 }
 0x14c   :  { %v1174_v34 = vld [vmem:[%s2929_s3 + $0x98] sm:$0xff] }
 0x14d   :  { %v1210_v35 = vadd.f32 %v2303_v46, %v1174_v34  ;;  %1140 = vst.msk [vmem:[%s2929_s3 + $0xa0] sm:$0xff] %vm19_vm3, %v1107_v32 }
 0x14e   :  { %v970_v37 = vpop.f32.mrf.mxu2  ;;  %v795_v40 = vpop.f32.mrf.mxu0 }
 0x14f   :  { %v1242_v38 = vmax.f32 %v1210_v35, 0.0  ;;  %v971_v39 = vadd.f32 %v970_v37, %v882_v36  ;;  %v884_v41 = vpop.f32.mrf.mxu1 }
 0x150   :  { %v885_v45 = vadd.f32 %v884_v41, %v795_v40 }
 0x151   :  { %1274 = vst.msk [vmem:[%s2929_s3 + $0x98] sm:$0xff] %vm19_vm3, %v1242_v38  ;;  %v1060_v43 = vadd.f32 %v1059_v22, %v971_v39  ;;  %v78_v38 = vld [vmem:[%s2929_s3 + $0xd0] sm:$0xff] }
 0x153   :  { %v1108_v44 = vadd.f32 %v1060_v43, %v73_v42  ;;  %v1064_v47 = vpop.f32.mrf.mxu3 }
 0x154   :  { %v1175_v48 = vld [vmem:[%s2929_s3 + $0xa0] sm:$0xff] }
 0x155   :  { %v1211_v49 = vadd.f32 %v2303_v46, %v1175_v48  ;;  %1141 = vst.msk [vmem:[%s2929_s3 + $0xa8] sm:$0xff] %vm19_vm3, %v1108_v44 }
 0x156   :  { %v973_v50 = vpop.f32.mrf.mxu2  ;;  %v797_v53 = vpop.f32.mrf.mxu0 }
 0x157   :  { %v1243_v51 = vmax.f32 %v1211_v49, 0.0  ;;  %v974_v52 = vadd.f32 %v973_v50, %v885_v45  ;;  %v886_v54 = vpop.f32.mrf.mxu1 }
 0x158   :  { %v887_v61 = vadd.f32 %v886_v54, %v797_v53 }
 0x159   :  { %1275 = vst.msk [vmem:[%s2929_s3 + $0xa0] sm:$0xff] %vm19_vm3, %v1243_v51  ;;  %v1063_v56 = vadd.f32 %v1062_v33, %v974_v52  ;;  %v79_v51 = vld [vmem:[%s2929_s3 + $0xd8] sm:$0xff] }
 0x15b   :  { %v1109_v57 = vadd.f32 %v1063_v56, %v74_v55  ;;  %v1067_v58 = vpop.f32.mrf.mxu3 }
 0x15c   :  { %v1176_v59 = vld [vmem:[%s2929_s3 + $0xa8] sm:$0xff] }
 0x15d   :  { %v1212_v60 = vadd.f32 %v2303_v46, %v1176_v59  ;;  %1142 = vst.msk [vmem:[%s2929_s3 + $0xb0] sm:$0xff] %vm19_vm3, %v1109_v57 }
 0x15e   :  { %v975_v62 = vpop.f32.mrf.mxu2  ;;  %v800_v1 = vpop.f32.mrf.mxu0 }
 0x15f   :  { %v1244_v63 = vmax.f32 %v1212_v60, 0.0  ;;  %v976_v0 = vadd.f32 %v975_v62, %v887_v61  ;;  %v889_v2 = vpop.f32.mrf.mxu1 }
 0x160   :  { %v890_v6 = vadd.f32 %v889_v2, %v800_v1 }
 0x161   :  { %1276 = vst.msk [vmem:[%s2929_s3 + $0xa8] sm:$0xff] %vm19_vm3, %v1244_v63  ;;  %v1065_v4 = vadd.f32 %v1064_v47, %v976_v0  ;;  %v80_v63 = vld [vmem:[%s2929_s3 + $0xe0] sm:$0xff] }
 0x163   :  { %v1110_v5 = vadd.f32 %v1065_v4, %v75_v3  ;;  %v1069_v8 = vpop.f32.mrf.mxu3 }
 0x164   :  { %v1177_v7 = vld [vmem:[%s2929_s3 + $0xb0] sm:$0xff] }
 0x165   :  { %v1213_v9 = vadd.f32 %v2303_v46, %v1177_v7  ;;  %1143 = vst.msk [vmem:[%s2929_s3 + $0xb8] sm:$0xff] %vm19_vm3, %v1110_v5 }
 0x166   :  { %v978_v10 = vpop.f32.mrf.mxu2  ;;  %v802_v13 = vpop.f32.mrf.mxu0 }
 0x167   :  { %v1245_v11 = vmax.f32 %v1213_v9, 0.0  ;;  %v979_v12 = vadd.f32 %v978_v10, %v890_v6  ;;  %v891_v14 = vpop.f32.mrf.mxu1  ;;  %v81_v9 = vld [vmem:[%s2929_s3 + $0xe8] sm:$0xff] }
 0x168   :  { %v892_v20 = vadd.f32 %v891_v14, %v802_v13 }
 0x169   :  { %1277 = vst.msk [vmem:[%s2929_s3 + $0xb0] sm:$0xff] %vm19_vm3, %v1245_v11  ;;  %v1068_v16 = vadd.f32 %v1067_v58, %v979_v12 }
 0x16b   :  { %v1111_v17 = vadd.f32 %v1068_v16, %v76_v15  ;;  %v1072_v22 = vpop.f32.mrf.mxu3 }
 0x16c   :  { %v1178_v18 = vld [vmem:[%s2929_s3 + $0xb8] sm:$0xff] }
 0x16d   :  { %v1214_v19 = vadd.f32 %v2303_v46, %v1178_v18  ;;  %1144 = vst.msk [vmem:[%s2929_s3 + $0xc0] sm:$0xff] %vm19_vm3, %v1111_v17 }
 0x16e   :  { %v980_v21 = vpop.f32.mrf.mxu2  ;;  %v805_v25 = vpop.f32.mrf.mxu0 }
 0x16f   :  { %v1246_v23 = vmax.f32 %v1214_v19, 0.0  ;;  %v981_v24 = vadd.f32 %v980_v21, %v892_v20  ;;  %v894_v26 = vpop.f32.mrf.mxu1  ;;  %v82_v21 = vld [vmem:[%s2929_s3 + $0xf0] sm:$0xff] }
 0x170   :  { %v895_v30 = vadd.f32 %v894_v26, %v805_v25 }
 0x171   :  { %1278 = vst.msk [vmem:[%s2929_s3 + $0xb8] sm:$0xff] %vm19_vm3, %v1246_v23  ;;  %v1070_v28 = vadd.f32 %v1069_v8, %v981_v24 }
 0x173   :  { %v1112_v29 = vadd.f32 %v1070_v28, %v77_v27  ;;  %v1074_v39 = vpop.f32.mrf.mxu3 }
 0x174   :  { %v1179_v31 = vld [vmem:[%s2929_s3 + $0xc0] sm:$0xff] }
 0x175   :  { %v1215_v32 = vadd.f32 %v2303_v46, %v1179_v31  ;;  %1145 = vst.msk [vmem:[%s2929_s3 + $0xc8] sm:$0xff] %vm19_vm3, %v1112_v29 }
 0x176   :  { %v983_v33 = vpop.f32.mrf.mxu2  ;;  %v807_v36 = vpop.f32.mrf.mxu0 }
 0x177   :  { %v1247_v34 = vmax.f32 %v1215_v32, 0.0  ;;  %v984_v35 = vadd.f32 %v983_v33, %v895_v30  ;;  %v896_v37 = vpop.f32.mrf.mxu1  ;;  %v83_v33 = vld [vmem:[%s2929_s3 + $0xf8] sm:$0xff] }
 0x178   :  { %v897_v44 = vadd.f32 %v896_v37, %v807_v36  ;;  %v1770_v36 = vld [vmem:[%s2928_s2] ss:$0 sm:$0xff] }
 0x179   :  { %1279 = vst.msk [vmem:[%s2929_s3 + $0xc0] sm:$0xff] %vm19_vm3, %v1247_v34  ;;  %v1073_v40 = vadd.f32 %v1072_v22, %v984_v35 }
 0x17b   :  { %v1113_v41 = vadd.f32 %v1073_v40, %v78_v38  ;;  %v1077_v53 = vpop.f32.mrf.mxu3 }
 0x17c   :  { %v1180_v42 = vld [vmem:[%s2929_s3 + $0xc8] sm:$0xff] }
 0x17d   :  { %v1216_v43 = vadd.f32 %v2303_v46, %v1180_v42  ;;  %1146 = vst.msk [vmem:[%s2929_s3 + $0xd0] sm:$0xff] %vm19_vm3, %v1113_v41 }
 0x17e   :  { %v985_v45 = vpop.f32.mrf.mxu2  ;;  %v810_v49 = vpop.f32.mrf.mxu0 }
 0x17f   :  { %v1248_v47 = vmax.f32 %v1216_v43, 0.0  ;;  %v986_v48 = vadd.f32 %v985_v45, %v897_v44  ;;  %v899_v50 = vpop.f32.mrf.mxu1 }
 0x180   :  { %v900_v55 = vadd.f32 %v899_v50, %v810_v49 }
 0x181   :  { %1280 = vst.msk [vmem:[%s2929_s3 + $0xc8] sm:$0xff] %vm19_vm3, %v1248_v47  ;;  %v1075_v52 = vadd.f32 %v1074_v39, %v986_v48 }
 0x183   :  { %v1114_v54 = vadd.f32 %v1075_v52, %v79_v51  ;;  %v1079_v3 = vpop.f32.mrf.mxu3 }
 0x184   :  { %v1181_v56 = vld [vmem:[%s2929_s3 + $0xd0] sm:$0xff] }
 0x185   :  { %v1217_v57 = vadd.f32 %v2303_v46, %v1181_v56  ;;  %1147 = vst.msk [vmem:[%s2929_s3 + $0xd8] sm:$0xff] %vm19_vm3, %v1114_v54 }
 0x186   :  { %v988_v58 = vpop.f32.mrf.mxu2  ;;  %v812_v61 = vpop.f32.mrf.mxu0 }
 0x187   :  { %v1249_v59 = vmax.f32 %v1217_v57, 0.0  ;;  %v989_v60 = vadd.f32 %v988_v58, %v900_v55  ;;  %v901_v62 = vpop.f32.mrf.mxu1 }
 0x188   :  { %v902_v5 = vadd.f32 %v901_v62, %v812_v61 }
 0x189   :  { %1281 = vst.msk [vmem:[%s2929_s3 + $0xd0] sm:$0xff] %vm19_vm3, %v1249_v59  ;;  %v1078_v0 = vadd.f32 %v1077_v53, %v989_v60 }
 0x18b   :  { %v1115_v1 = vadd.f32 %v1078_v0, %v80_v63  ;;  %v1082_v17 = vpop.f32.mrf.mxu3 }
 0x18c   :  { %v1182_v2 = vld [vmem:[%s2929_s3 + $0xd8] sm:$0xff] }
 0x18d   :  { %v1218_v4 = vadd.f32 %v2303_v46, %v1182_v2  ;;  %1148 = vst.msk [vmem:[%s2929_s3 + $0xe0] sm:$0xff] %vm19_vm3, %v1115_v1 }
 0x18e   :  { %v990_v6 = vpop.f32.mrf.mxu2  ;;  %v815_v10 = vpop.f32.mrf.mxu0 }
 0x18f   :  { %v1250_v7 = vmax.f32 %v1218_v4, 0.0  ;;  %v991_v8 = vadd.f32 %v990_v6, %v902_v5  ;;  %v904_v11 = vpop.f32.mrf.mxu1 }
 0x190   :  { %v905_v14 = vadd.f32 %v904_v11, %v815_v10 }
 0x191   :  { %1282 = vst.msk [vmem:[%s2929_s3 + $0xd8] sm:$0xff] %vm19_vm3, %v1250_v7  ;;  %v1080_v12 = vadd.f32 %v1079_v3, %v991_v8 }
 0x193   :  { %v1116_v13 = vadd.f32 %v1080_v12, %v81_v9  ;;  %v1084_v32 = vpop.f32.mrf.mxu3 }
 0x194   :  { %v1183_v15 = vld [vmem:[%s2929_s3 + $0xe0] sm:$0xff] }
 0x195   :  { %v1219_v16 = vadd.f32 %v2303_v46, %v1183_v15  ;;  %1149 = vst.msk [vmem:[%s2929_s3 + $0xe8] sm:$0xff] %vm19_vm3, %v1116_v13 }
 0x196   :  { %v993_v18 = vpop.f32.mrf.mxu2  ;;  %v817_v23 = vpop.f32.mrf.mxu0 }
 0x197   :  { %v1251_v19 = vmax.f32 %v1219_v16, 0.0  ;;  %v994_v20 = vadd.f32 %v993_v18, %v905_v14  ;;  %v906_v24 = vpop.f32.mrf.mxu1 }
 0x198   :  { %v907_v28 = vadd.f32 %v906_v24, %v817_v23 }
 0x199   :  { %1283 = vst.msk [vmem:[%s2929_s3 + $0xe0] sm:$0xff] %vm19_vm3, %v1251_v19  ;;  %v1083_v22 = vadd.f32 %v1082_v17, %v994_v20 }
 0x19b   :  { %v1117_v25 = vadd.f32 %v1083_v22, %v82_v21 }
 0x19c   :  { %v1184_v26 = vld [vmem:[%s2929_s3 + $0xe8] sm:$0xff] }
 0x19d   :  { %v1220_v27 = vadd.f32 %v2303_v46, %v1184_v26  ;;  %1150 = vst.msk [vmem:[%s2929_s3 + $0xf0] sm:$0xff] %vm19_vm3, %v1117_v25 }
 0x19e   :  { %v995_v29 = vpop.f32.mrf.mxu2 }
 0x19f   :  { %v1252_v30 = vmax.f32 %v1220_v27, 0.0  ;;  %v996_v31 = vadd.f32 %v995_v29, %v907_v28 }
 0x1a1   :  { %1284 = vst.msk [vmem:[%s2929_s3 + $0xe8] sm:$0xff] %vm19_vm3, %v1252_v30  ;;  %v1085_v46 = vadd.f32 %v1084_v32, %v996_v31 }
 0x1a3   :  { %v1118_v34 = vadd.f32 %v1085_v46, %v83_v33 }
 0x1a4   :  { %v1185_v35 = vld [vmem:[%s2929_s3 + $0xf0] sm:$0xff] }
 0x1a5   :  { %v1221_v37 = vadd.f32 %v1770_v36, %v1185_v35  ;;  %1151 = vst.msk [vmem:[%s2929_s3 + $0xf8] sm:$0xff] %vm19_vm3, %v1118_v34 }
 0x1a7   :  { %v1253_v38 = vmax.f32 %v1221_v37, 0.0 }
 0x1a9   :  { %1285 = vst.msk [vmem:[%s2929_s3 + $0xf0] sm:$0xff] %vm19_vm3, %v1253_v38 }
 0x1ac   :  { %v1186_v39 = vld [vmem:[%s2929_s3 + $0xf8] sm:$0xff] }
 0x1ad   :  { %v1222_v40 = vadd.f32 %v1770_v36, %v1186_v39 }
 0x1af   :  { %v1254_v41 = vmax.f32 %v1222_v40, 0.0 }
 0x1b1   :  { %1286 = vst.msk [vmem:[%s2929_s3 + $0xf8] sm:$0xff] %vm19_vm3, %v1254_v41 }

</bundles_post_ra>
